<compile_context>
chip_gen: v7x
topology: tpu7x:2x2x1
jax: 0.10.0
libtpu: 0.0.40
codegen_flags: <defaults>
</compile_context>

<pallas_src>
import jax
import jax.numpy as jnp
from jax import lax
from jax.experimental import pallas as pl
from jax.experimental.pallas import tpu as pltpu


def _shortcut_kernel(x_ref, sel_ref, o_ref):
    # x_ref:   (B, C_in, H*W)      B images, all input channels, flat spatial
    # sel_ref: (H*W, L)            constant 0/1 spatial-selection matrix
    # o_ref:   (B, C_out, L)       output slab for the same B images
    b, c_in, hw = x_ref.shape
    c_out, l = o_ref.shape[1], o_ref.shape[2]
    pad = (c_out - c_in) // 2

    # One big selection matmul for the whole block (M = B*C_in rows).
    # Leading-dim collapse (B, C_in, HW) -> (B*C_in, HW) is layout-free.
    lhs = x_ref[...].reshape(b * c_in, hw)
    y = jnp.dot(
        lhs,
        sel_ref[...],
        precision=lax.Precision.HIGHEST,       # exact copy of f32 activations
        preferred_element_type=jnp.float32,
    )
    y = y.reshape(b, c_in, l).astype(o_ref.dtype)

    # Zero-pad channels + data written with direct slice stores (no concat).
    if pad > 0:
        z = jnp.zeros((b, pad, l), dtype=o_ref.dtype)
        o_ref[:, pl.ds(0, pad), :] = z
        o_ref[:, pl.ds(pad + c_in, pad), :] = z
    o_ref[:, pl.ds(pad, c_in), :] = y


def _pick_block_batch(n, per_image_bytes, max_block_bytes=2 << 20):
    """Largest divisor B of n that keeps >=2 grid steps (v7x megacore) and
    whose per-step input block stays under ~2 MB (double-buffered by Pallas,
    comfortably inside every generation's scoped VMEM default)."""
    divs = [d for d in range(1, n + 1) if n % d == 0]
    cands = [d for d in divs if n // d >= 2] or divs
    fit = [d for d in cands if d * per_image_bytes <= max_block_bytes]
    return max(fit) if fit else min(cands)


def lambda_layer(x, planes):
    """Option-A ResNet shortcut: x[:, :, ::2, ::2] zero-padded on channels."""
    N, C_in, H, W = x.shape
    pad = planes // 4
    C_out = C_in + 2 * pad
    H_out = (H + 1) // 2
    W_out = (W + 1) // 2
    L = H_out * W_out
    HW = H * W

    # Free, contiguous reshape: lane-dense (C_in, H*W) input layout.
    x_flat = x.reshape(N, C_in, HW)

    # 0/1 selection matrix mapping flat (H, W) -> flat (H_out, W_out) with
    # stride 2 on both axes.  Built once; constant index_map => fetched once.
    k = jnp.arange(HW, dtype=jnp.int32)[:, None]
    m = jnp.arange(L, dtype=jnp.int32)[None, :]
    k_src = 2 * (m // W_out) * W + 2 * (m % W_out)
    sel = (k == k_src).astype(x.dtype)                         # (HW, L)

    B = _pick_block_batch(N, C_in * HW * x.dtype.itemsize)
    grid = (N // B,)

    out_flat = pl.pallas_call(
        _shortcut_kernel,
        out_shape=jax.ShapeDtypeStruct((N, C_out, L), x.dtype),
        grid_spec=pltpu.PrefetchScalarGridSpec(
            num_scalar_prefetch=0,
            grid=grid,
            in_specs=[
                pl.BlockSpec((B, C_in, HW), lambda n: (n, 0, 0)),
                pl.BlockSpec((HW, L), lambda n: (0, 0)),
            ],
            out_specs=pl.BlockSpec((B, C_out, L), lambda n: (n, 0, 0)),
        ),
        compiler_params=pltpu.CompilerParams(
            dimension_semantics=("parallel",)),
    )(x_flat, sel)

    # Free contiguous reshape back to NCHW.
    return out_flat.reshape(N, C_out, H_out, W_out)


if __name__ == "__main__":
    # LambdaLayer itself has no parameters; the lambda is fixed by `planes`.
    key = jax.random.PRNGKey(0)
    N, C_in, H, W = 8, 16, 16, 16
    planes = 32  # pad = planes // 4 = 8 per side -> C_out = 32

    x = jax.random.normal(key, (N, C_in, H, W), dtype=jnp.float32)

    out = jax.block_until_ready(lambda_layer(x, planes))

    # Pure-JAX reference of the PyTorch lambda.
    pad = planes // 4
    ref = jnp.pad(x[:, :, ::2, ::2], ((0, 0), (pad, pad), (0, 0), (0, 0)))

    assert out.shape == ref.shape, (out.shape, ref.shape)
    assert jnp.allclose(out, ref, atol=1e-5), float(jnp.max(jnp.abs(out - ref)))
    print("KERNEL_OK")
</pallas_src>

<mosaic_0001>
module attributes {stable_mosaic.version = 11 : i64} {
  func.func @_shortcut_kernel(%arg0: i32, %arg1: memref<4x16x256xf32, #tpu.memory_space<vmem>>, %arg2: memref<256x64xf32, #tpu.memory_space<vmem>>, %arg3: memref<4x32x64xf32, #tpu.memory_space<vmem>>) attributes {dimension_semantics = [#tpu.dimension_semantics<parallel>], iteration_bounds = array<i64: 2>, scalar_prefetch = 0 : i64, scratch_operands = 0 : i64, tpu.core_type = #tpu.core_type<tc>, window_params = [{transform_indices = @transform_0, window_bounds = array<i64: 4, 16, 256>}, {pipeline_mode = #tpu.pipeline_mode<synchronous>, transform_indices = @transform_1, window_bounds = array<i64: 256, 64>}, {transform_indices = @transform_2, window_bounds = array<i64: 4, 32, 64>}]} {
    %c0 = arith.constant 0 : index
    %c0_0 = arith.constant 0 : index
    %c0_1 = arith.constant 0 : index
    %0 = vector.load %arg1[%c0, %c0_0, %c0_1] : memref<4x16x256xf32, #tpu.memory_space<vmem>>, vector<4x16x256xf32>
    %1 = vector.shape_cast %0 : vector<4x16x256xf32> to vector<64x256xf32>
    %c0_2 = arith.constant 0 : index
    %c0_3 = arith.constant 0 : index
    %2 = vector.load %arg2[%c0_2, %c0_3] : memref<256x64xf32, #tpu.memory_space<vmem>>, vector<256x64xf32>
    %cst = arith.constant dense<0.000000e+00> : vector<64x64xf32>
    %3 = tpu.matmul %1, %2, %cst {dimension_numbers = #tpu.dot_dimension_numbers<[1], [0], [0], [1], [0, 0, 1, 1], [], []>, precision = #tpu.contract_precision<fp32>} : vector<64x256xf32>, vector<256x64xf32>, vector<64x64xf32> -> vector<64x64xf32>
    %4 = vector.shape_cast %3 : vector<64x64xf32> to vector<4x16x64xf32>
    %cst_4 = arith.constant 0.000000e+00 : f32
    %5 = vector.broadcast %cst_4 : f32 to vector<4x8x64xf32>
    %c0_5 = arith.constant 0 : index
    %c0_6 = arith.constant 0 : index
    %c0_7 = arith.constant 0 : index
    %6 = vector.load %arg3[%c0_5, %c0_6, %c0_7] : memref<4x32x64xf32, #tpu.memory_space<vmem>>, vector<4x8x64xf32>
    tpu.vector_store %arg3[%c0_5, %c0_6, %c0_7], %5 {strides = array<i32>} : memref<4x32x64xf32, #tpu.memory_space<vmem>>, vector<4x8x64xf32>,
    %c0_8 = arith.constant 0 : index
    %c24 = arith.constant 24 : index
    %c0_9 = arith.constant 0 : index
    %7 = vector.load %arg3[%c0_8, %c24, %c0_9] : memref<4x32x64xf32, #tpu.memory_space<vmem>>, vector<4x8x64xf32>
    tpu.vector_store %arg3[%c0_8, %c24, %c0_9], %5 {strides = array<i32>} : memref<4x32x64xf32, #tpu.memory_space<vmem>>, vector<4x8x64xf32>,
    %c0_10 = arith.constant 0 : index
    %c8 = arith.constant 8 : index
    %c0_11 = arith.constant 0 : index
    %8 = vector.load %arg3[%c0_10, %c8, %c0_11] : memref<4x32x64xf32, #tpu.memory_space<vmem>>, vector<4x16x64xf32>
    tpu.vector_store %arg3[%c0_10, %c8, %c0_11], %4 {strides = array<i32>} : memref<4x32x64xf32, #tpu.memory_space<vmem>>, vector<4x16x64xf32>,
    return
  }
  func.func @transform_0(%arg0: i32) -> (i32, i32, i32) {
    %c0_i32 = arith.constant 0 : i32
    %c0_i32_0 = arith.constant 0 : i32
    %c0_i32_1 = arith.constant 0 : i32
    return %arg0, %c0_i32, %c0_i32_0 : i32, i32, i32
  }
  func.func @transform_1(%arg0: i32) -> (i32, i32) {
    %c0_i32 = arith.constant 0 : i32
    %c0_i32_0 = arith.constant 0 : i32
    %c0_i32_1 = arith.constant 0 : i32
    return %c0_i32, %c0_i32_0 : i32, i32
  }
  func.func @transform_2(%arg0: i32) -> (i32, i32, i32) {
    %c0_i32 = arith.constant 0 : i32
    %c0_i32_0 = arith.constant 0 : i32
    %c0_i32_1 = arith.constant 0 : i32
    return %arg0, %c0_i32, %c0_i32_0 : i32, i32, i32
  }
}

</mosaic_0001>

<bundles_post_ra>
// kernel: tpu_custom_call.1
= control target key start
LH: loop header
LB: loop body
LE: loop exit
PB: predicated region body
PF: predicated region fallthrough
CT: control target
= control target key end

     0   :  { %7 = vsyncpa [#allocation3], 0  ;;  %s3105_s0 = inlined_call_operand.vmem [shape: f32[8,16,256], index: 0, kind: input, shape index: {}]   ;;  %s3106_s1 = inlined_call_operand.vmem [shape: f32[256,64], index: 1, kind: input, shape index: {}]   ;;  %s3107_s2 = inlined_call_operand.hbm [shape: f32[8,32,64], index: 2, kind: output, shape index: {}]  }
   0x1   :  { %9 = vsyncpa [#allocation3 + $0x1], 0  ;;  %s2214_s9 = smov 0   ;;  %s2216_s10 = smov 0  }
   0x2   :  { %s2218_s11 = smov 0   ;;  %s2220_s12 = smov 0  }
   0x3 LB: > { %s2235_s13 = sadd.s32 4294967295, %s2193_s12   ;;  %s1544_s14 = sadd.s32 4294967294, %s2193_s12   ;;  %s2193_s12 = sphi %s2220_s12, %s3345_s12   ;;  %s2189_s11 = sphi %s2218_s11, %s3344_s11   ;;  %s2185_s10 = sphi %s2216_s10, %s3343_s10   ;;  %s2181_s9 = sphi %s2214_s9, %s3342_s9  }
   0x4   : > { %s2239_s15 = sadd.s32 1, %s2193_s12   ;;  %s69_s16 = sadd.s32 1, %s2189_s11 }
   0x5   : > { %s66_s17 = ssub.s32 %s2193_s12, %s2239_s15  ;;  %p79_p0 = scmp.ne.s32.totalorder %s2189_s11, %s2185_s10 }
   0x6   : > { %p67_p1 = scmp.eq.s32.totalorder %s66_s17, 0  ;;  %p80_p2 = scmp.eq.s32.totalorder %s2235_s13, 1 }
   0x7   : > { %p85_p3 = scmp.ne.s32.totalorder %s2185_s10, %s2181_s9  ;;  %p86_p4 = scmp.eq.s32.totalorder %s1544_s14, 1 }
   0x8   : > { %s2250_s18 = scalar_select %p67_p1, %s2189_s11, %s69_s16  }
   0x9   : > { %p2252_p5 = por %p80_p2, %p79_p0  ;;  %p2256_p6 = por %p86_p4, %p85_p3 }
   0xa   : > { %p1547_p7 = scmp.ge.s32.totalorder %s2193_s12, 1  ;;  %p117_p8 = scmp.lt.s32.totalorder %s2193_s12, 3 }
   0xc   : > { %p118_p9 = pnand %p1547_p7, %p117_p8 }
   0xe   : > { %121 = sbr.rel (%p118_p9) target bundleno = 409 (0x199), region = 28 }
  0x15   : > { %v180_v0 = vld [vmem:[%s3106_s1 + $0x80] sm:$0xff]  ;;  %v181_v1 = vld [vmem:[%s3106_s1 + $0x88] sm:$0xff]  ;;  %v182_v7 = vld [vmem:[%s3106_s1 + $0x90] sm:$0xff]  ;;  %s1549_s29 = sshll.u32 %s2235_s13, 2  ;;  %s137_s6 = sand.u32 1, %s2185_s10   ;;  %vm1450_vm0 = vcmask 523264  }
  0x16   : > { %v164_v2 = vld [vmem:[%s3106_s1] sm:$0xff]  ;;  %v245_v3 = vand.u32 4294901760, %v180_v0  ;;  %v248_v4 = vand.u32 4294901760, %v181_v1  ;;  %v165_v5 = vld [vmem:[%s3106_s1 + $0x8] sm:$0xff]  ;;  %v183_v8 = vld [vmem:[%s3106_s1 + $0x98] sm:$0xff]  ;;  %v251_v10 = vand.u32 4294901760, %v182_v7 }
  0x17   : > { %v197_v6 = vand.u32 4294901760, %v164_v2  ;;  %v200_v9 = vand.u32 4294901760, %v165_v5  ;;  %v254_v11 = vand.u32 4294901760, %v183_v8  ;;  %v166_v12 = vld [vmem:[%s3106_s1 + $0x10] sm:$0xff]  ;;  %v167_v13 = vld [vmem:[%s3106_s1 + $0x18] sm:$0xff]  ;;  %v184_v18 = vld [vmem:[%s3106_s1 + $0xa0] sm:$0xff] }
  0x18   : > { %v2286_v14 = vpack.c.bf16 %v248_v4, %v245_v3  ;;  %v203_v16 = vand.u32 4294901760, %v166_v12  ;;  %v206_v17 = vand.u32 4294901760, %v167_v13  ;;  %v185_v19 = vld [vmem:[%s3106_s1 + $0xa8] sm:$0xff]  ;;  %v2302_v23 = vsub.f32 %v182_v7, %v251_v10  ;;  %v168_v24 = vld [vmem:[%s3106_s1 + $0x20] sm:$0xff]  ;;  %v186_v38 = vld [vmem:[%s3106_s1 + $0xb0] sm:$0xff]  ;;  %p2457_p10 = scmp.lt.s32.totalorder %s1549_s29, 7 }
  0x19   : > { %v2288_v15 = vsub.f32 %v164_v2, %v197_v6  ;;  %v2296_v20 = vpack.c.bf16 %v200_v9, %v197_v6  ;;  %v2298_v21 = vsub.f32 %v165_v5, %v200_v9  ;;  %v2300_v22 = vpack.c.bf16 %v254_v11, %v251_v10  ;;  %v169_v25 = vld [vmem:[%s3106_s1 + $0x28] sm:$0xff]  ;;  %v187_v43 = vld [vmem:[%s3106_s1 + $0xb8] sm:$0xff]  ;;  %v170_v56 = vld [vmem:[%s3106_s1 + $0x30] sm:$0xff]  ;;  %s1548_s7 = sshll.u32 %s137_s6, 7  ;;  %s1560_s14 = sshll.u32 %s2235_s13, 11 }
  0x1a   : > { %3220 = vst [vmem:[#allocation5_spill] sm:$0xff] %v2286_v14  ;;  %1898 = vmatprep.subr.bf16.mxu0 %v2286_v14  ;;  %v2311_v26 = vsub.f32 %v183_v8, %v254_v11  ;;  %v2313_v27 = vpack.c.bf16 %v206_v17, %v203_v16  ;;  %v2315_v28 = vsub.f32 %v166_v12, %v203_v16  ;;  %v257_v30 = vand.u32 4294901760, %v184_v18  ;;  %v171_v57 = vld [vmem:[%s3106_s1 + $0x38] sm:$0xff]  ;;  %v188_v6 = vld [vmem:[%s3106_s1 + $0xc0] sm:$0xff]  ;;  %v189_v7 = vld [vmem:[%s3106_s1 + $0xc8] sm:$0xff]  ;;  %s3347_s29 = smov (!%p2457_p10, %s1549_s29), 7  ;;  %s3056_s22 = scalar_lea.hbm %s3107_s2, %s1560_s14 }
  0x1b   : > { %3221 = vst [vmem:[#allocation6_spill] sm:$0xff] %v2296_v20  ;;  %v2317_v29 = vsub.f32 %v167_v13, %v206_v17  ;;  %1900 = vmatpush3.bf16.msra.mxu0 %v2296_v20  ;;  %v260_v31 = vand.u32 4294901760, %v185_v19  ;;  %v2320_v32 = vsub.f32 %v180_v0, %v245_v3  ;;  %v2322_v33 = vsub.f32 %v181_v1, %v248_v4  ;;  %v172_v12 = vld [vmem:[%s3106_s1 + $0x40] sm:$0xff]  ;;  %s1558_s26 = sshll.u32 %s3347_s29, 5  ;;  %s3019_s8 = scalar_lea.vmem [#allocation2], %s1548_s7 }
  0x1c   : > { %1902 = vmatprep.subr.bf16.mxu0 %v2300_v22  ;;  %v209_v34 = vand.u32 4294901760, %v168_v24  ;;  %v212_v35 = vand.u32 4294901760, %v169_v25  ;;  %v3125_v36 = vand.u32 4294901760, %v2288_v15  ;;  %v3124_v37 = vand.u32 4294901760, %v2298_v21  ;;  %s2552_s5 = scalar_lea.vmem %s3105_s0, %s1558_s26  ;;  %s1482_s16 = sshll.u32 %s3019_s8, 4  ;;  %s3058_s16 = int_to_ptr.vmem [resolvable:$true] %s1482_s16 }
  0x1d   : > { %v2330_v39 = vpack.c.bf16 %v260_v31, %v257_v30  ;;  %v2332_v40 = vsub.f32 %v184_v18, %v257_v30  ;;  %v2334_v41 = vsub.f32 %v185_v19, %v260_v31  ;;  %v3127_v42 = vand.u32 4294901760, %v2320_v32  ;;  %v173_v31 = vld [vmem:[%s3106_s1 + $0x48] sm:$0xff]  ;;  %s3064_s13 = scalar_lea.sflag [#allocation3], %s137_s6  ;;  %s2131_s23 = scalar_lea.vmem %s3058_s16, 2048 }
  0x1e   : > { %v3126_v44 = vand.u32 4294901760, %v2322_v33  ;;  %v2341_v45 = vpack.c.bf16 %v212_v35, %v209_v34  ;;  %v2343_v46 = vsub.f32 %v168_v24, %v209_v34  ;;  %v2345_v47 = vsub.f32 %v169_v25, %v212_v35  ;;  %p2132_p11 = scmp.ne.s32.totalorder %s3058_s16, %s2131_s23  ;;  %s2196_s24 = smov [#allocation2]  }
  0x1f   : > { %3222 = vst [vmem:[#allocation7_spill] sm:$0xff] %v2334_v41  ;;  %1904 = vmatpush3.bf16.msra.mxu0 %v2313_v27  ;;  %v529_v48 = vsub.f32 %v2320_v32, %v3127_v42  ;;  %v417_v49 = vsub.f32 %v2288_v15, %v3125_v36  ;;  %v424_v50 = vsub.f32 %v2298_v21, %v3124_v37  ;;  %v263_v51 = vand.u32 4294901760, %v186_v38  ;;  %v148_v42 = vld [vmem:[%s2552_s5] sm:$0xff]  ;;  %s2135_s25 = sshll.u32 %s2196_s24, 4  ;;  %s2136_s25 = int_to_ptr.vmem [resolvable:$false] %s2135_s25 }
  0x20   : > { %1906 = vmatprep.subr.bf16.mxu0 %v2330_v39  ;;  %v536_v52 = vsub.f32 %v2322_v33, %v3126_v44  ;;  %v266_v53 = vand.u32 4294901760, %v187_v43  ;;  %v3123_v54 = vand.u32 4294901760, %v2302_v23  ;;  %v3120_v55 = vand.u32 4294901760, %v2311_v26  ;;  %v149_v44 = vld [vmem:[%s2552_s5 + $0x8] sm:$0xff]  ;;  %p2133_p12 = pnand %p2132_p11, %p2252_p5  ;;  %s2137_s26 = scalar_lea.vmem %s2136_s25, 4096 }
  0x21   : > { %v530_v58 = vand.u32 4294901760, %v529_v48  ;;  %v418_v59 = vand.u32 4294901760, %v417_v49  ;;  %v425_v60 = vand.u32 4294901760, %v424_v50  ;;  %v2369_v61 = vsub.f32 %v186_v38, %v263_v51  ;;  %p2138_p0 = scmp.lt.s32.totalorder %s3058_s16, %s2136_s25  ;;  %p2139_p1 = scmp.lt.s32.totalorder %s2137_s26, %s2131_s23 }
  0x22   : > { %v537_v62 = vand.u32 4294901760, %v536_v52  ;;  %v2371_v63 = vpack.c.bf16 %v266_v53, %v263_v51  ;;  %v2373_v0 = vsub.f32 %v187_v43, %v266_v53  ;;  %v543_v1 = vsub.f32 %v2302_v23, %v3123_v54  ;;  %p2134_p13 = pneg %p2133_p12 }
  0x23   : > { %1908 = vmatpush3.bf16.msra.mxu0 %v2341_v45  ;;  %v1931_v2 = vpack.c.bf16 %v425_v60, %v418_v59  ;;  %v550_v3 = vsub.f32 %v2311_v26, %v3120_v55  ;;  %v215_v4 = vand.u32 4294901760, %v170_v56  ;;  %v218_v5 = vand.u32 4294901760, %v171_v57  ;;  %v191_v59 = vld [vmem:[%s3106_s1 + $0xd8] sm:$0xff]  ;;  %p2140_p2 = por %p2139_p1, %p2138_p0 }
  0x24   : > { %v1929_v8 = vpack.c.bf16 %v537_v62, %v530_v58  ;;  %1910 = vmatprep.subr.bf16.mxu0 %v2371_v63  ;;  %v544_v9 = vand.u32 4294901760, %v543_v1  ;;  %v3119_v10 = vand.u32 4294901760, %v2315_v28  ;;  %v3118_v11 = vand.u32 4294901760, %v2317_v29  ;;  %v190_v58 = vld [vmem:[%s3106_s1 + $0xd0] sm:$0xff] }
  0x25   : > { %v551_v13 = vand.u32 4294901760, %v550_v3  ;;  %v2394_v16 = vpack.c.bf16 %v218_v5, %v215_v4  ;;  %v2396_v17 = vsub.f32 %v170_v56, %v215_v4  ;;  %v2398_v18 = vsub.f32 %v171_v57, %v218_v5  ;;  %v174_v3 = vld [vmem:[%s3106_s1 + $0x50] sm:$0xff]  ;;  %p2141_p3 = pnand %p2140_p2, %p2134_p13 }
  0x26   : > { %1930 = vmatprep.subr.bf16.mxu1 %v1929_v8  ;;  %v431_v19 = vsub.f32 %v2315_v28, %v3119_v10  ;;  %v438_v24 = vsub.f32 %v2317_v29, %v3118_v11  ;;  %v269_v25 = vand.u32 4294901760, %v188_v6  ;;  %v272_v30 = vand.u32 4294901760, %v189_v7 }
  0x27   : > { %3223 = vst [vmem:[#allocation8_spill] sm:$0xff] %v2394_v16  ;;  %1932 = vmatpush3.bf16.msra.mxu1 %v1931_v2  ;;  %v1933_v34 = vpack.c.bf16 %v551_v13, %v544_v9  ;;  %1912 = vmatpush3.bf16.msra.mxu0 %v2394_v16  ;;  %v3115_v35 = vand.u32 4294901760, %v2332_v40  ;;  %v3114_v38 = vand.u32 4294901760, %v2334_v41  ;;  %v221_v43 = vand.u32 4294901760, %v172_v12  ;;  %v157_v16 = vld [vmem:[%s2552_s5 + $0x48] sm:$0xff] }
  0x28   : > { %v432_v48 = vand.u32 4294901760, %v431_v19  ;;  %v439_v49 = vand.u32 4294901760, %v438_v24  ;;  %v2412_v50 = vpack.c.bf16 %v272_v30, %v269_v25  ;;  %v2414_v51 = vsub.f32 %v188_v6, %v269_v25  ;;  %v175_v19 = vld [vmem:[%s3106_s1 + $0x58] sm:$0xff] }
  0x29   : > { %1934 = vmatprep.subr.bf16.mxu1 %v1933_v34  ;;  %v2416_v52 = vsub.f32 %v189_v7, %v272_v30  ;;  %v557_v53 = vsub.f32 %v2332_v40, %v3115_v35  ;;  %v564_v56 = vsub.f32 %v2334_v41, %v3114_v38  ;;  %v224_v57 = vand.u32 4294901760, %v173_v31 }
  0x2a   : > { %3224 = vst [vmem:[#allocation9_spill] sm:$0xff] %v2412_v50  ;;  %v1935_v60 = vpack.c.bf16 %v439_v49, %v432_v48  ;;  %1914 = vmatprep.subr.bf16.mxu0 %v2412_v50  ;;  %v2431_v62 = vsub.f32 %v172_v12, %v221_v43  ;;  %v3112_v1 = vand.u32 4294901760, %v2343_v46  ;;  %v3111_v2 = vand.u32 4294901760, %v2345_v47 }
  0x2b   : > { %v558_v4 = vand.u32 4294901760, %v557_v53  ;;  %v565_v5 = vand.u32 4294901760, %v564_v56  ;;  %v2439_v6 = vpack.c.bf16 %v224_v57, %v221_v43  ;;  %v2441_v7 = vsub.f32 %v173_v31, %v224_v57 }
  0x2c   : > { %1936 = vmatpush3.bf16.msra.mxu1 %v1935_v60  ;;  %v445_v8 = vsub.f32 %v2343_v46, %v3112_v1  ;;  %v452_v9 = vsub.f32 %v2345_v47, %v3111_v2  ;;  %v275_v12 = vand.u32 4294901760, %v190_v58  ;;  %v278_v13 = vand.u32 4294901760, %v191_v59 }
  0x2d   : > { %3225 = vst [vmem:[#allocation10_spill] sm:$0xff] %v2439_v6  ;;  %v1937_v24 = vpack.c.bf16 %v565_v5, %v558_v4  ;;  %1916 = vmatpush3.bf16.msra.mxu0 %v2439_v6  ;;  %v3109_v25 = vand.u32 4294901760, %v2369_v61  ;;  %v3108_v30 = vand.u32 4294901760, %v2373_v0  ;;  %v227_v31 = vand.u32 4294901760, %v174_v3  ;;  %v192_v4 = vld [vmem:[%s3106_s1 + $0xe0] sm:$0xff] }
  0x2e   : > { %v446_v34 = vand.u32 4294901760, %v445_v8  ;;  %v453_v43 = vand.u32 4294901760, %v452_v9  ;;  %v2461_v48 = vpack.c.bf16 %v278_v13, %v275_v12  ;;  %v2463_v49 = vsub.f32 %v190_v58, %v275_v12  ;;  %v193_v58 = vld [vmem:[%s3106_s1 + $0xe8] sm:$0xff]  ;;  %v176_v12 = vld [vmem:[%s3106_s1 + $0x60] sm:$0xff] }
  0x2f   : > { %1938 = vmatprep.subr.bf16.mxu1 %v1937_v24  ;;  %v2465_v53 = vsub.f32 %v191_v59, %v278_v13  ;;  %v571_v56 = vsub.f32 %v2369_v61, %v3109_v25  ;;  %v578_v57 = vsub.f32 %v2373_v0, %v3108_v30  ;;  %v230_v60 = vand.u32 4294901760, %v175_v19 }
  0x30   : > { %3227 = vst [vmem:[#allocation11_spill] sm:$0xff] %v2461_v48  ;;  %v1939_v59 = vpack.c.bf16 %v453_v43, %v446_v34  ;;  %1918 = vmatprep.subr.bf16.mxu0 %v2461_v48  ;;  %v2480_v5 = vsub.f32 %v174_v3, %v227_v31  ;;  %v3110_v8 = vand.u32 4294901760, %v2396_v17  ;;  %v3113_v9 = vand.u32 4294901760, %v2398_v18 }
  0x31   : > { %v572_v13 = vand.u32 4294901760, %v571_v56  ;;  %v579_v24 = vand.u32 4294901760, %v578_v57  ;;  %v2487_v30 = vpack.c.bf16 %v230_v60, %v227_v31  ;;  %v2489_v25 = vsub.f32 %v175_v19, %v230_v60  ;;  %v177_v19 = vld [vmem:[%s3106_s1 + $0x68] sm:$0xff] }
  0x32   : > { %1940 = vmatpush3.bf16.msra.mxu1 %v1939_v59  ;;  %v459_v3 = vsub.f32 %v2396_v17, %v3110_v8  ;;  %v466_v34 = vsub.f32 %v2398_v18, %v3113_v9  ;;  %v281_v43 = vand.u32 4294901760, %v192_v4  ;;  %v284_v56 = vand.u32 4294901760, %v193_v58 }
  0x33   : > { %3228 = vst [vmem:[#allocation12_spill] sm:$0xff] %v2487_v30  ;;  %v1941_v31 = vpack.c.bf16 %v579_v24, %v572_v13  ;;  %1920 = vmatpush3.bf16.msra.mxu0 %v2487_v30  ;;  %v3117_v57 = vand.u32 4294901760, %v2414_v51  ;;  %v3116_v60 = vand.u32 4294901760, %v2416_v52  ;;  %v233_v59 = vand.u32 4294901760, %v176_v12 }
  0x34   : > { %v460_v8 = vand.u32 4294901760, %v459_v3  ;;  %v467_v2 = vand.u32 4294901760, %v466_v34  ;;  %v2509_v1 = vpack.c.bf16 %v284_v56, %v281_v43  ;;  %v2511_v9 = vsub.f32 %v192_v4, %v281_v43  ;;  %v194_v3 = vld [vmem:[%s3106_s1 + $0xf0] sm:$0xff]  ;;  %v195_v4 = vld [vmem:[%s3106_s1 + $0xf8] sm:$0xff] }
  0x35   : > { %1942 = vmatprep.subr.bf16.mxu1 %v1941_v31  ;;  %v2513_v38 = vsub.f32 %v193_v58, %v284_v56  ;;  %v585_v13 = vsub.f32 %v2414_v51, %v3117_v57  ;;  %v592_v24 = vsub.f32 %v2416_v52, %v3116_v60  ;;  %v236_v35 = vand.u32 4294901760, %v177_v19  ;;  %v178_v31 = vld [vmem:[%s3106_s1 + $0x70] sm:$0xff] }
  0x36   : > { %3229 = vst [vmem:[#allocation13_spill] sm:$0xff] %v2509_v1  ;;  %v1943_v58 = vpack.c.bf16 %v467_v2, %v460_v8  ;;  %1922 = vmatprep.subr.bf16.mxu0 %v2509_v1  ;;  %v2529_v34 = vsub.f32 %v176_v12, %v233_v59  ;;  %v3122_v43 = vand.u32 4294901760, %v2431_v62  ;;  %v3121_v56 = vand.u32 4294901760, %v2441_v7 }
  0x37   : > { %v586_v60 = vand.u32 4294901760, %v585_v13  ;;  %v593_v57 = vand.u32 4294901760, %v592_v24  ;;  %v2536_v11 = vpack.c.bf16 %v236_v35, %v233_v59  ;;  %v2538_v10 = vsub.f32 %v177_v19, %v236_v35  ;;  %v179_v13 = vld [vmem:[%s3106_s1 + $0x78] sm:$0xff] }
  0x38   : > { %1944 = vmatpush3.bf16.msra.mxu1 %v1943_v58  ;;  %v473_v2 = vsub.f32 %v2431_v62, %v3122_v43  ;;  %v480_v8 = vsub.f32 %v2441_v7, %v3121_v56  ;;  %v287_v12 = vand.u32 4294901760, %v194_v3  ;;  %v290_v55 = vand.u32 4294901760, %v195_v4 }
  0x39   : > { %3230 = vst [vmem:[#allocation14_spill] sm:$0xff] %v2536_v11  ;;  %v1945_v35 = vpack.c.bf16 %v593_v57, %v586_v60  ;;  %1924 = vmatpush3.bf16.msra.mxu0 %v2536_v11  ;;  %v3128_v19 = vand.u32 4294901760, %v2463_v49  ;;  %v3129_v59 = vand.u32 4294901760, %v2465_v53  ;;  %v239_v24 = vand.u32 4294901760, %v178_v31 }
  0x3a   : > { %v474_v58 = vand.u32 4294901760, %v473_v2  ;;  %v481_v56 = vand.u32 4294901760, %v480_v8  ;;  %v2557_v43 = vpack.c.bf16 %v290_v55, %v287_v12  ;;  %v2559_v54 = vsub.f32 %v194_v3, %v287_v12 }
  0x3b   : > { %1946 = vmatprep.subr.bf16.mxu1 %v1945_v35  ;;  %v2561_v37 = vsub.f32 %v195_v4, %v290_v55  ;;  %v599_v57 = vsub.f32 %v2463_v49, %v3128_v19  ;;  %v606_v60 = vsub.f32 %v2465_v53, %v3129_v59  ;;  %v242_v36 = vand.u32 4294901760, %v179_v13 }
  0x3c   : > { %3231 = vst [vmem:[#allocation15_spill] sm:$0xff] %v2557_v43  ;;  %3232 = vst [vmem:[#allocation16_spill] sm:$0xff] %v2559_v54  ;;  %v1947_v2 = vpack.c.bf16 %v481_v56, %v474_v58  ;;  %1926 = vmatprep.subr.bf16.mxu0 %v2557_v43  ;;  %v2572_v8 = vsub.f32 %v178_v31, %v239_v24  ;;  %v3133_v3 = vand.u32 4294901760, %v2480_v5  ;;  %v3132_v55 = vand.u32 4294901760, %v2489_v25 }
  0x3d   : > { %3233 = vst [vmem:[#allocation17_spill] sm:$0xff] %v2561_v37  ;;  %v600_v4 = vand.u32 4294901760, %v599_v57  ;;  %v607_v12 = vand.u32 4294901760, %v606_v60  ;;  %v2576_v35 = vpack.c.bf16 %v242_v36, %v239_v24  ;;  %v2578_v19 = vsub.f32 %v179_v13, %v242_v36 }
  0x3e   : > { %3234 = vst [vmem:[#allocation18_spill] sm:$0xff] %v2572_v8  ;;  %1948 = vmatpush3.bf16.msra.mxu1 %v1947_v2  ;;  %v487_v59 = vsub.f32 %v2480_v5, %v3133_v3  ;;  %v494_v56 = vsub.f32 %v2489_v25, %v3132_v55  ;;  %v2586_v31 = vand.u32 4294901760, %v149_v44  ;;  %v2588_v58 = vand.u32 4294901760, %v148_v42  ;;  %v150_v3 = vld [vmem:[%s2552_s5 + $0x10] sm:$0xff] }
  0x3f   : > { %3235 = vst [vmem:[#allocation19_spill] sm:$0xff] %v2576_v35  ;;  %3236 = vst [vmem:[#allocation20_spill] sm:$0xff] %v2578_v19  ;;  %v1949_v43 = vpack.c.bf16 %v607_v12, %v600_v4  ;;  %1928 = vmatpush3.bf16.msra.mxu0 %v2576_v35  ;;  %v3138_v36 = vand.u32 4294901760, %v2511_v9  ;;  %v3141_v13 = vand.u32 4294901760, %v2513_v38  ;;  %v1961_v24 = vpack.c.bf16 %v2322_v33, %v2320_v32 }
  0x40   : > { %3237 = vst [vmem:[#allocation21_spill] sm:$0xff] %v2586_v31  ;;  %3238 = vst [vmem:[#allocation22_spill] sm:$0xff] %v2588_v58  ;;  %v488_v57 = vand.u32 4294901760, %v487_v59  ;;  %v495_v60 = vand.u32 4294901760, %v494_v56  ;;  %v2596_v2 = vsub.f32 %v149_v44, %v2586_v31  ;;  %v2599_v55 = vsub.f32 %v148_v42, %v2588_v58  ;;  %638 = vmatprep.mubr.f32.mxu1 %v2586_v31  ;;  %v151_v56 = vld [vmem:[%s2552_s5 + $0x18] sm:$0xff] }
  0x41   : > { %1950 = vmatprep.subr.bf16.mxu1 %v1949_v43  ;;  %v613_v4 = vsub.f32 %v2511_v9, %v3138_v36  ;;  %v620_v12 = vsub.f32 %v2513_v38, %v3141_v13  ;;  %1962 = vmatprep.subr.bf16.mxu0 %v1961_v24  ;;  %v3146_v59 = vand.u32 4294901760, %v2529_v34  ;;  %v3149_v44 = vand.u32 4294901760, %v2538_v10 }
  0x42   : > { %3239 = vst [vmem:[#allocation23_spill] sm:$0xff] %v2596_v2  ;;  %3240 = vst [vmem:[#allocation24_spill] sm:$0xff] %v2599_v55  ;;  %v1951_v42 = vpack.c.bf16 %v495_v60, %v488_v57  ;;  %v3152_v35 = vand.u32 4294901760, %v2596_v2  ;;  %v3155_v43 = vand.u32 4294901760, %v2599_v55  ;;  %v1963_v31 = vpack.c.bf16 %v2298_v21, %v2288_v15 }
  0x43   : > { %v614_v36 = vand.u32 4294901760, %v613_v4  ;;  %v621_v11 = vand.u32 4294901760, %v620_v12  ;;  %v501_v24 = vsub.f32 %v2529_v34, %v3146_v59  ;;  %v508_v13 = vsub.f32 %v2538_v10, %v3149_v44 }
  0x44   : > { %1952 = vmatpush3.bf16.msra.mxu1 %v1951_v42  ;;  %v295_v57 = vsub.f32 %v2596_v2, %v3152_v35  ;;  %v301_v60 = vsub.f32 %v2599_v55, %v3155_v43  ;;  %v2628_v4 = vand.u32 4294901760, %v151_v56  ;;  %v2630_v12 = vand.u32 4294901760, %v150_v3  ;;  %v153_v2 = vld [vmem:[%s2552_s5 + $0x28] sm:$0xff] }
  0x45   : > { %v1953_v1 = vpack.c.bf16 %v621_v11, %v614_v36  ;;  %v502_v30 = vand.u32 4294901760, %v501_v24  ;;  %v509_v59 = vand.u32 4294901760, %v508_v13  ;;  %v3156_v48 = vand.u32 4294901760, %v2559_v54 }
  0x46   : > { %3241 = vst [vmem:[#allocation25_spill] sm:$0xff] %v2628_v4  ;;  %3242 = vst [vmem:[#allocation26_spill] sm:$0xff] %v2630_v12  ;;  %v296_v44 = vand.u32 4294901760, %v295_v57  ;;  %v302_v42 = vand.u32 4294901760, %v301_v60  ;;  %v2634_v6 = vsub.f32 %v151_v56, %v2628_v4  ;;  %v2637_v35 = vsub.f32 %v150_v3, %v2630_v12 }
  0x47   : > { %1954 = vmatprep.subr.bf16.mxu1 %v1953_v1  ;;  %v1955_v43 = vpack.c.bf16 %v509_v59, %v502_v30  ;;  %v627_v11 = vsub.f32 %v2559_v54, %v3156_v48  ;;  %v3157_v36 = vand.u32 4294901760, %v2561_v37  ;;  %v1965_v13 = vpack.c.bf16 %v2311_v26, %v2302_v23  ;;  %v152_v1 = vld [vmem:[%s2552_s5 + $0x20] sm:$0xff] }
  0x48   : > { %3243 = vst [vmem:[#allocation27_spill] sm:$0xff] %v2634_v6  ;;  %3244 = vst [vmem:[#allocation28_spill] sm:$0xff] %v2637_v35  ;;  %297 = vmatprep.mubr.f32.mxu0 %v296_v44  ;;  %v3160_v24 = vand.u32 4294901760, %v2634_v6  ;;  %v3161_v56 = vand.u32 4294901760, %v2637_v35  ;;  %v3168_v3 = vand.u32 4294901760, %v2572_v8  ;;  %v3173_v57 = vand.u32 4294901760, %v2578_v19 }
  0x49   : > { %303 = vmatmul.mubr.f32.vlgmr.msra.gmra.mrb[0].mxu0 %v302_v42  ;;  %1956 = vmatpush3.bf16.msra.mxu1 %v1955_v43  ;;  %v628_v30 = vand.u32 4294901760, %v627_v11  ;;  %v634_v59 = vsub.f32 %v2561_v37, %v3157_v36  ;;  %v1967_v44 = vpack.c.bf16 %v2317_v29, %v2315_v28  ;;  %v2656_v60 = vand.u32 4294901760, %v153_v2 }
  0x4a   : > { %1964 = vmatpush3.bf16.msra.mxu0 %v1963_v31  ;;  %v310_v48 = vsub.f32 %v2634_v6, %v3160_v24  ;;  %v316_v43 = vsub.f32 %v2637_v35, %v3161_v56  ;;  %v515_v42 = vsub.f32 %v2572_v8, %v3168_v3  ;;  %v522_v11 = vsub.f32 %v2578_v19, %v3173_v57  ;;  %v155_v56 = vld [vmem:[%s2552_s5 + $0x38] sm:$0xff]  ;;  %v154_v35 = vld [vmem:[%s2552_s5 + $0x30] sm:$0xff] }
  0x4b   : > { %3245 = vst [vmem:[#allocation29_spill] sm:$0xff] %v2656_v60  ;;  %v635_v36 = vand.u32 4294901760, %v634_v59  ;;  %1966 = vmatprep.subr.bf16.mxu0 %v1965_v13  ;;  %v2671_v31 = vsub.f32 %v153_v2, %v2656_v60  ;;  %v2673_v55 = vand.u32 4294901760, %v152_v1  ;;  %v1969_v24 = vpack.c.bf16 %v2334_v41, %v2332_v40  ;;  %v156_v2 = vld [vmem:[%s2552_s5 + $0x40] sm:$0xff] }
  0x4c   : > { %v311_v6 = vand.u32 4294901760, %v310_v48  ;;  %v317_v50 = vand.u32 4294901760, %v316_v43  ;;  %v516_v3 = vand.u32 4294901760, %v515_v42  ;;  %v523_v8 = vand.u32 4294901760, %v522_v11 }
  0x4d   : > { %3246 = vst [vmem:[#allocation30_spill] sm:$0xff] %v2671_v31  ;;  %3247 = vst [vmem:[#allocation31_spill] sm:$0xff] %v2673_v55  ;;  %v1957_v57 = vpack.c.bf16 %v635_v36, %v628_v30  ;;  %v3177_v59 = vand.u32 4294901760, %v2671_v31  ;;  %v2682_v13 = vsub.f32 %v152_v1, %v2673_v55  ;;  %v1971_v41 = vpack.c.bf16 %v2345_v47, %v2343_v46 }
  0x4e   : > { %312 = vmatprep.mubr.f32.mxu0 %v311_v6  ;;  %v1959_v19 = vpack.c.bf16 %v523_v8, %v516_v3  ;;  %1968 = vmatpush3.bf16.msra.mxu0 %v1967_v44  ;;  %v2687_v48 = vand.u32 4294901760, %v155_v56  ;;  %v2689_v43 = vand.u32 4294901760, %v154_v35  ;;  %v2695_v30 = vand.u32 4294901760, %v157_v16  ;;  %v159_v6 = vld [vmem:[%s2552_s5 + $0x58] sm:$0xff]  ;;  %v158_v44 = vld [vmem:[%s2552_s5 + $0x50] sm:$0xff] }
  0x4f   : > { %3248 = vst [vmem:[#allocation32_spill] sm:$0xff] %v2682_v13  ;;  %318 = vmatmul.mubr.f32.gmra.mrb[2].mxu0 %v317_v50  ;;  %1958 = vmatprep.subr.bf16.mxu1 %v1957_v57  ;;  %v325_v36 = vsub.f32 %v2671_v31, %v3177_v59  ;;  %v3178_v1 = vand.u32 4294901760, %v2682_v13  ;;  %v1973_v50 = vpack.c.bf16 %v2373_v0, %v2369_v61  ;;  %v2706_v57 = vand.u32 4294901760, %v156_v2 }
  0x50   : > { %3249 = vst [vmem:[#allocation33_spill] sm:$0xff] %v2687_v48  ;;  %1960 = vmatpush3.bf16.msra.mxu1 %v1959_v19  ;;  %1970 = vmatprep.subr.bf16.mxu0 %v1969_v24  ;;  %v2699_v8 = vsub.f32 %v155_v56, %v2687_v48  ;;  %v2702_v3 = vsub.f32 %v154_v35, %v2689_v43  ;;  %v2723_v59 = vand.u32 4294901760, %v159_v6 }
  0x51   : > { %v326_v42 = vand.u32 4294901760, %v325_v36  ;;  %v331_v11 = vsub.f32 %v2682_v13, %v3178_v1  ;;  %1994 = vmatprep.subr.bf16.mxu1 %v2286_v14  ;;  %v1975_v19 = vpack.c.bf16 %v2398_v18, %v2396_v17  ;;  %v2716_v24 = vsub.f32 %v157_v16, %v2695_v30  ;;  %v161_v1 = vld [vmem:[%s2552_s5 + $0x68] sm:$0xff] }
  0x52   : > { %3250 = vst [vmem:[#allocation34_spill] sm:$0xff] %v2699_v8  ;;  %3251 = vst [vmem:[#allocation35_spill] sm:$0xff] %v2702_v3  ;;  %1972 = vmatpush3.bf16.msra.mxu0 %v1971_v41  ;;  %v3187_v35 = vand.u32 4294901760, %v2699_v8  ;;  %v3190_v56 = vand.u32 4294901760, %v2702_v3  ;;  %v2721_v36 = vsub.f32 %v156_v2, %v2706_v57  ;;  %v1977_v41 = vpack.c.bf16 %v2416_v52, %v2414_v51 }
  0x53   : > { %3252 = vst [vmem:[#allocation36_spill] sm:$0xff] %v2716_v24  ;;  %327 = vmatprep.mubr.f32.mxu0 %v326_v42  ;;  %v332_v13 = vand.u32 4294901760, %v331_v11  ;;  %640 = vmatmul.mubr.f32.vlgmr.msra.gmra.mrb[0].mxu1 %v2588_v58  ;;  %v2730_v16 = vand.u32 4294901760, %v158_v44  ;;  %v2742_v31 = vsub.f32 %v159_v6, %v2723_v59  ;;  %v160_v58 = vld [vmem:[%s2552_s5 + $0x60] sm:$0xff] }
  0x54   : > { %3253 = vst [vmem:[#allocation37_spill] sm:$0xff] %v2721_v36  ;;  %1996 = vmatpush3.bf16.msra.mxu1 %v2296_v20  ;;  %v340_v2 = vsub.f32 %v2699_v8, %v3187_v35  ;;  %645 = vmatprep.mubr.f32.mxu1 %v2628_v4  ;;  %v346_v42 = vsub.f32 %v2702_v3, %v3190_v56  ;;  %v3255_v20 = vand.u32 4294901760, %v2716_v24  ;;  %v2753_v56 = vand.u32 4294901760, %v161_v1 }
  0x55   : > { %3254 = vst [vmem:[#allocation38_spill] sm:$0xff] %v2742_v31  ;;  %333 = vmatmul.mubr.f32.gmra.mrb[4].mxu0 %v332_v13  ;;  %1974 = vmatprep.subr.bf16.mxu0 %v1973_v50  ;;  %v1979_v35 = vpack.c.bf16 %v2441_v7, %v2431_v62  ;;  %v2751_v4 = vsub.f32 %v158_v44, %v2730_v16  ;;  %v3257_v13 = vand.u32 4294901760, %v2721_v36  ;;  %v163_v50 = vld [vmem:[%s2552_s5 + $0x78] sm:$0xff] }
  0x56   : > { %v355_v14 = vsub.f32 %v2716_v24, %v3255_v20  ;;  %v341_v11 = vand.u32 4294901760, %v340_v2  ;;  %v347_v3 = vand.u32 4294901760, %v346_v42  ;;  %1998 = vmatprep.subr.bf16.mxu1 %v2300_v22  ;;  %1976 = vmatpush3.bf16.msra.mxu0 %v1975_v19  ;;  %v3199_v20 = vand.u32 4294901760, %v2742_v31  ;;  %v162_v42 = vld [vmem:[%s2552_s5 + $0x70] sm:$0xff] }
  0x57   : > { %3256 = vst [vmem:[#allocation39_spill] sm:$0xff] %v2751_v4  ;;  %v361_v6 = vsub.f32 %v2721_v36, %v3257_v13  ;;  %647 = vmatmul.mubr.f32.gmra.mrb[2].mxu1 %v2630_v12  ;;  %1978 = vmatprep.subr.bf16.mxu0 %v1977_v41  ;;  %v3204_v44 = vand.u32 4294901760, %v2751_v4  ;;  %v2764_v8 = vsub.f32 %v161_v1, %v2753_v56  ;;  %v2766_v2 = vand.u32 4294901760, %v160_v58 }
  0x58   : > { %v356_v24 = vand.u32 4294901760, %v355_v14  ;;  %342 = vmatprep.mubr.f32.mxu0 %v341_v11  ;;  %2000 = vmatpush3.bf16.msra.mxu1 %v2313_v27  ;;  %v370_v13 = vsub.f32 %v2742_v31, %v3199_v20  ;;  %v1981_v14 = vpack.c.bf16 %v2465_v53, %v2463_v49  ;;  %v1983_v41 = vpack.c.bf16 %v2489_v25, %v2480_v5 }
  0x59   : > { %3258 = vst [vmem:[#allocation40_spill] sm:$0xff] %v2764_v8  ;;  %v362_v19 = vand.u32 4294901760, %v361_v6  ;;  %348 = vmatmul.mubr.f32.gmra.mrb[6].mxu0 %v347_v3  ;;  %652 = vmatprep.mubr.f32.mxu1 %v2656_v60  ;;  %v376_v1 = vsub.f32 %v2751_v4, %v3204_v44  ;;  %v3209_v11 = vand.u32 4294901760, %v2764_v8  ;;  %v2783_v6 = vsub.f32 %v160_v58, %v2766_v2 }
  0x5a   : > { %v2785_v12 = vand.u32 4294901760, %v163_v50  ;;  %357 = vmatprep.mubr.f32.mxu0 %v356_v24  ;;  %2002 = vmatprep.subr.bf16.mxu1 %v2330_v39  ;;  %v371_v20 = vand.u32 4294901760, %v370_v13  ;;  %v1985_v3 = vpack.c.bf16 %v2513_v38, %v2511_v9  ;;  %v1987_v60 = vpack.c.bf16 %v2538_v10, %v2529_v34 }
  0x5b   : > { %v2792_v31 = vand.u32 4294901760, %v162_v42  ;;  %654 = vmatmul.mubr.f32.gmra.mrb[4].mxu1 %v2673_v55  ;;  %1980 = vmatpush3.bf16.msra.mxu0 %v1979_v35  ;;  %v385_v58 = vsub.f32 %v2764_v8, %v3209_v11  ;;  %v1989_v13 = vpack.c.bf16 %v2561_v37, %v2559_v54  ;;  %v377_v4 = vand.u32 4294901760, %v376_v1 }
  0x5c   : > { %v2800_v44 = vsub.f32 %v163_v50, %v2785_v12  ;;  %2004 = vmatpush3.bf16.msra.mxu1 %v2341_v45  ;;  %659 = vmatprep.mubr.f32.mxu1 %v2687_v48  ;;  %v3259_v35 = vand.u32 4294901760, %v2320_v32  ;;  %v3260_v11 = vand.u32 4294901760, %v2322_v33  ;;  %v3261_v24 = vand.u32 4294901760, %v2288_v15 }
  0x5d   : > { %v2807_v55 = vsub.f32 %v162_v42, %v2792_v31  ;;  %v3262_v50 = vand.u32 4294901760, %v2298_v21  ;;  %363 = vmatmul.mubr.f32.gmra.mrb[8].mxu0 %v362_v19  ;;  %1982 = vmatprep.subr.bf16.mxu0 %v1981_v14  ;;  %v386_v37 = vand.u32 4294901760, %v385_v58  ;;  %v3263_v54 = vand.u32 4294901760, %v2783_v6 }
  0x5e   : > { %v2025_v8 = vpack.c.bf16 %v3260_v11, %v3259_v35  ;;  %v399_v42 = vand.u32 4294901760, %v2800_v44  ;;  %v3264_v48 = vand.u32 4294901760, %v2302_v23  ;;  %v3265_v32 = vand.u32 4294901760, %v2311_v26  ;;  %372 = vmatprep.mubr.f32.mxu0 %v371_v20  ;;  %2006 = vmatprep.subr.bf16.mxu1 %v2371_v63 }
  0x5f   : > { %v2027_v36 = vpack.c.bf16 %v3262_v50, %v3261_v24  ;;  %v391_v1 = vsub.f32 %v2783_v6, %v3263_v54  ;;  %v405_v15 = vand.u32 4294901760, %v2807_v55  ;;  %v3266_v21 = vand.u32 4294901760, %v2315_v28  ;;  %v3269_v54 = vld [vmem:[#allocation7_spill] sm:$0xff]  ;;  %661 = vmatmul.mubr.f32.gmra.mrb[6].mxu1 %v2689_v43  ;;  %1984 = vmatpush3.bf16.msra.mxu0 %v1983_v41 }
  0x60   : > { %v2029_v33 = vpack.c.bf16 %v3265_v32, %v3264_v48  ;;  %v3267_v19 = vand.u32 4294901760, %v2317_v29  ;;  %v3268_v11 = vand.u32 4294901760, %v2332_v40  ;;  %v3270_v58 = vand.u32 4294901760, %v3269_v54  ;;  %v3277_v32 = vld [vmem:[#allocation8_spill] sm:$0xff]  ;;  %666 = vmatprep.mubr.f32.mxu1 %v2695_v30  ;;  %1986 = vmatprep.subr.bf16.mxu0 %v1985_v3 }
  0x61   : > { %v3271_v23 = vand.u32 4294901760, %v2343_v46  ;;  %v3272_v26 = vand.u32 4294901760, %v2345_v47  ;;  %v400_v28 = vsub.f32 %v2800_v44, %v399_v42  ;;  %v3273_v29 = vand.u32 4294901760, %v2369_v61  ;;  %2008 = vmatpush3.bf16.msra.mxu1 %v3277_v32  ;;  %378 = vmatmul.mubr.f32.gmra.mrb[10].mxu0 %v377_v4  ;;  %v3288_v4 = vld [vmem:[#allocation9_spill] sm:$0xff] }
  0x62   : > { %v2031_v14 = vpack.c.bf16 %v3267_v19, %v3266_v21  ;;  %v2033_v24 = vpack.c.bf16 %v3270_v58, %v3268_v11  ;;  %v3274_v20 = vand.u32 4294901760, %v2373_v0  ;;  %v3275_v35 = vand.u32 4294901760, %v2396_v17  ;;  %387 = vmatprep.mubr.f32.mxu0 %v386_v37  ;;  %2010 = vmatprep.subr.bf16.mxu1 %v3288_v4 }
  0x63   : > { %v2035_v48 = vpack.c.bf16 %v3272_v26, %v3271_v23  ;;  %v3276_v50 = vand.u32 4294901760, %v2398_v18  ;;  %v406_v47 = vsub.f32 %v2807_v55, %v405_v15  ;;  %v3278_v41 = vand.u32 4294901760, %v2414_v51  ;;  %668 = vmatmul.mubr.f32.gmra.mrb[8].mxu1 %v2706_v57  ;;  %1988 = vmatpush3.bf16.msra.mxu0 %v1987_v60  ;;  %v3297_v60 = vld [vmem:[#allocation23_spill] sm:$0xff] }
  0x64   : > { %v2037_v40 = vpack.c.bf16 %v3274_v20, %v3273_v29  ;;  %v3279_v61 = vand.u32 4294901760, %v2416_v52  ;;  %v3280_v0 = vand.u32 4294901760, %v2431_v62  ;;  %v3281_v17 = vand.u32 4294901760, %v2441_v7  ;;  %v3293_v29 = vld [vmem:[#allocation10_spill] sm:$0xff]  ;;  %673 = vmatprep.mubr.f32.mxu1 %v2723_v59  ;;  %1990 = vmatprep.subr.bf16.mxu0 %v1989_v13  ;;  %v3299_v13 = vld [vmem:[#allocation24_spill] sm:$0xff]  ;;  %v3300_v20 = vld [vmem:[#allocation15_spill] sm:$0xff] }
  0x65   : > { %v2039_v46 = vpack.c.bf16 %v3276_v50, %v3275_v35  ;;  %v392_v18 = vand.u32 4294901760, %v391_v1  ;;  %v3282_v11 = vand.u32 4294901760, %v2463_v49  ;;  %v3283_v54 = vand.u32 4294901760, %v2465_v53  ;;  %2012 = vmatpush3.bf16.msra.mxu1 %v3293_v29  ;;  %v3301_v35 = vld [vmem:[#allocation27_spill] sm:$0xff] }
  0x66   : > { %v2041_v21 = vpack.c.bf16 %v3279_v61, %v3278_v41  ;;  %v2864_v19 = vpack.c.bf16 %v3281_v17, %v3280_v0  ;;  %v3284_v51 = vand.u32 4294901760, %v2480_v5  ;;  %v3285_v52 = vand.u32 4294901760, %v2489_v25  ;;  %v3291_v25 = vld [vmem:[#allocation18_spill] sm:$0xff]  ;;  %v3292_v5 = vld [vmem:[#allocation20_spill] sm:$0xff]  ;;  %v3302_v50 = vld [vmem:[#allocation19_spill] sm:$0xff] }
  0x67   : > { %v2870_v58 = vpack.c.bf16 %v3283_v54, %v3282_v11  ;;  %v3286_v62 = vand.u32 4294901760, %v2511_v9  ;;  %v3287_v7 = vand.u32 4294901760, %v2513_v38  ;;  %v401_v49 = vand.u32 4294901760, %v400_v28  ;;  %393 = vmatmul.mubr.f32.gmra.mrb[12].mxu0 %v392_v18  ;;  %v3294_v38 = vld [vmem:[#allocation11_spill] sm:$0xff]  ;;  %675 = vmatmul.mubr.f32.gmra.mrb[10].mxu1 %v2730_v16  ;;  %v3298_v28 = vld [vmem:[#allocation14_spill] sm:$0xff]  ;;  %v3305_v41 = vld [vmem:[#allocation5_spill] sm:$0xff] }
  0x68   : > { %v2876_v23 = vpack.c.bf16 %v3285_v52, %v3284_v51  ;;  %v3289_v53 = vand.u32 4294901760, %v2529_v34  ;;  %v3290_v3 = vand.u32 4294901760, %v2538_v10  ;;  %v1991_v9 = vpack.c.bf16 %v3292_v5, %v3291_v25  ;;  %2014 = vmatprep.subr.bf16.mxu1 %v3294_v38  ;;  %v3295_v10 = vld [vmem:[#allocation12_spill] sm:$0xff]  ;;  %680 = vmatprep.mubr.f32.mxu1 %v2753_v56  ;;  %v3296_v34 = vld [vmem:[#allocation13_spill] sm:$0xff]  ;;  %v3306_v61 = vld [vmem:[#allocation30_spill] sm:$0xff] }
  0x69   : > { %v2882_v26 = vpack.c.bf16 %v3287_v7, %v3286_v62  ;;  %v407_v37 = vand.u32 4294901760, %v406_v47  ;;  %402 = vmatprep.mubr.f32.mxu0 %v401_v49  ;;  %2016 = vmatpush3.bf16.msra.mxu1 %v3295_v10  ;;  %v3304_v47 = vld [vmem:[#allocation28_spill] sm:$0xff]  ;;  %v3307_v0 = vand.u32 4294901760, %v3299_v13  ;;  %v3311_v18 = vld [vmem:[#allocation34_spill] sm:$0xff]  ;;  %v3314_v11 = vld [vmem:[#allocation35_spill] sm:$0xff]  ;;  %v3331_v7 = vand.u32 4294901760, %v3292_v5 }
  0x6a   : > { %v2889_v1 = vpack.c.bf16 %v3290_v3, %v3289_v53  ;;  %1992 = vmatpush3.bf16.msra.mxu0 %v1991_v9  ;;  %2018 = vmatprep.subr.bf16.mxu1 %v3296_v34  ;;  %v3310_v17 = vld [vmem:[#allocation32_spill] sm:$0xff]  ;;  %v3327_v51 = vld [vmem:[#allocation17_spill] sm:$0xff]  ;;  %v3335_v3 = vand.u32 4294901760, %v2783_v6 }
  0x6b   : > { %408 = vmatmul.mubr.f32.gmra.mrb[14].mxu0 %v407_v37  ;;  %2026 = vmatprep.subr.bf16.mxu0 %v2025_v8  ;;  %v3303_v8 = vand.u32 4294901760, %v3297_v60  ;;  %v3315_v54 = vld [vmem:[#allocation36_spill] sm:$0xff]  ;;  %v3334_v53 = vld [vmem:[#allocation21_spill] sm:$0xff] }
  0x6c   : > { %824 = vmatprep.mubr.f32.mxu0 %v3297_v60  ;;  %682 = vmatmul.mubr.f32.gmra.mrb[12].mxu1 %v2766_v2  ;;  %v3339_v5 = vld [vmem:[#allocation29_spill] sm:$0xff] }
  0x6d   : > { %2020 = vmatpush3.bf16.msra.mxu1 %v3298_v28  ;;  %687 = vmatprep.mubr.f32.mxu1 %v2785_v12 }
  0x6e   : > { %2022 = vmatprep.subr.bf16.mxu1 %v3300_v20 }
  0x6f   : > { %827 = vmatmul.mubr.f32.vlgmr.msra.gmra.mrb[16].mxu0 %v3299_v13 }
  0x70   : > { %2028 = vmatpush3.bf16.msra.mxu0 %v2027_v36  ;;  %833 = vmatprep.mubr.f32.mxu0 %v3301_v35  ;;  %v3308_v36 = vld [vmem:[#allocation6_spill] sm:$0xff] }
  0x71   : > { %689 = vmatmul.mubr.f32.gmra.mrb[14].mxu1 %v2792_v31  ;;  %2030 = vmatprep.subr.bf16.mxu0 %v2029_v33  ;;  %v3309_v33 = vand.u32 4294901760, %v3301_v35 }
  0x72   : > { %2024 = vmatpush3.bf16.msra.mxu1 %v3302_v50  ;;  %994 = vmatprep.mubr.f32.mxu1 %v3303_v8 }
  0x73   : > { %836 = vmatmul.mubr.f32.gmra.mrb[18].mxu0 %v3304_v47  ;;  %2058 = vmatprep.subr.bf16.mxu1 %v3305_v41 }
  0x74   : > { %2032 = vmatpush3.bf16.msra.mxu0 %v2031_v14  ;;  %842 = vmatprep.mubr.f32.mxu0 %v3306_v61  ;;  %v3312_v14 = vand.u32 4294901760, %v3304_v47 }
  0x75   : > { %998 = vmatmul.mubr.f32.vlgmr.msra.gmra.mrb[16].mxu1 %v3307_v0  ;;  %2034 = vmatprep.subr.bf16.mxu0 %v2033_v24  ;;  %v3313_v24 = vand.u32 4294901760, %v3306_v61 }
  0x76   : > { %2060 = vmatpush3.bf16.msra.mxu1 %v3308_v36  ;;  %1005 = vmatprep.mubr.f32.mxu1 %v3309_v33 }
  0x77   : > { %845 = vmatmul.mubr.f32.gmra.mrb[20].mxu0 %v3310_v17  ;;  %2062 = vmatprep.subr.bf16.mxu1 %v2300_v22  ;;  %v3316_v22 = vand.u32 4294901760, %v3310_v17 }
  0x78   : > { %2036 = vmatpush3.bf16.msra.mxu0 %v2035_v48  ;;  %851 = vmatprep.mubr.f32.mxu0 %v3311_v18  ;;  %v3317_v48 = vand.u32 4294901760, %v3311_v18 }
  0x79   : > { %1009 = vmatmul.mubr.f32.gmra.mrb[18].mxu1 %v3312_v14  ;;  %2038 = vmatprep.subr.bf16.mxu0 %v2037_v40  ;;  %v3319_v40 = vld [vmem:[#allocation38_spill] sm:$0xff] }
  0x7a   : > { %2064 = vmatpush3.bf16.msra.mxu1 %v2313_v27  ;;  %1016 = vmatprep.mubr.f32.mxu1 %v3313_v24  ;;  %v3318_v27 = vld [vmem:[#allocation37_spill] sm:$0xff]  ;;  %v3329_v62 = vand.u32 4294901760, %v3319_v40 }
  0x7b   : > { %854 = vmatmul.mubr.f32.gmra.mrb[22].mxu0 %v3314_v11  ;;  %2066 = vmatprep.subr.bf16.mxu1 %v2330_v39  ;;  %v3320_v39 = vand.u32 4294901760, %v3314_v11 }
  0x7c   : > { %2040 = vmatpush3.bf16.msra.mxu0 %v2039_v46  ;;  %860 = vmatprep.mubr.f32.mxu0 %v3315_v54  ;;  %v3322_v46 = vld [vmem:[#allocation39_spill] sm:$0xff] }
  0x7d   : > { %1020 = vmatmul.mubr.f32.gmra.mrb[20].mxu1 %v3316_v22  ;;  %2042 = vmatprep.subr.bf16.mxu0 %v2041_v21  ;;  %v3324_v21 = vand.u32 4294901760, %v3318_v27 }
  0x7e   : > { %2068 = vmatpush3.bf16.msra.mxu1 %v2341_v45  ;;  %1027 = vmatprep.mubr.f32.mxu1 %v3317_v48  ;;  %v3321_v45 = vand.u32 4294901760, %v3315_v54 }
  0x7f   : > { %863 = vmatmul.mubr.f32.gmra.mrb[24].mxu0 %v3318_v27  ;;  %2070 = vmatprep.subr.bf16.mxu1 %v2371_v63  ;;  %v3323_v63 = vld [vmem:[#allocation40_spill] sm:$0xff] }
  0x80   : > { %2044 = vmatpush3.bf16.msra.mxu0 %v2864_v19  ;;  %869 = vmatprep.mubr.f32.mxu0 %v3319_v40  ;;  %v3325_v19 = vld [vmem:[#allocation16_spill] sm:$0xff]  ;;  %v3333_v49 = vand.u32 4294901760, %v3323_v63 }
  0x81   : > { %1031 = vmatmul.mubr.f32.gmra.mrb[22].mxu1 %v3320_v39  ;;  %2046 = vmatprep.subr.bf16.mxu0 %v2870_v58  ;;  %v3326_v58 = vand.u32 4294901760, %v3325_v19 }
  0x82   : > { %2072 = vmatpush3.bf16.msra.mxu1 %v3277_v32  ;;  %1038 = vmatprep.mubr.f32.mxu1 %v3321_v45  ;;  %v3328_v32 = vand.u32 4294901760, %v3327_v51 }
  0x83   : > { %872 = vmatmul.mubr.f32.gmra.mrb[26].mxu0 %v3322_v46  ;;  %2074 = vmatprep.subr.bf16.mxu1 %v3288_v4  ;;  %v3332_v4 = vand.u32 4294901760, %v3322_v46 }
  0x84   : > { %2048 = vmatpush3.bf16.msra.mxu0 %v2876_v23  ;;  %878 = vmatprep.mubr.f32.mxu0 %v3323_v63  ;;  %v2053_v52 = vpack.c.bf16 %v3328_v32, %v3326_v58  ;;  %v3330_v23 = vand.u32 4294901760, %v3291_v25  ;;  %v3337_v25 = vld [vmem:[#allocation25_spill] sm:$0xff] }
  0x85   : > { %1042 = vmatmul.mubr.f32.gmra.mrb[24].mxu1 %v3324_v21  ;;  %2050 = vmatprep.subr.bf16.mxu0 %v2882_v26 }
  0x86   : > { %2076 = vmatpush3.bf16.msra.mxu1 %v3293_v29  ;;  %1049 = vmatprep.mubr.f32.mxu1 %v3329_v62  ;;  %v2055_v26 = vpack.c.bf16 %v3331_v7, %v3330_v23 }
  0x87   : > { %881 = vmatmul.mubr.f32.gmra.mrb[28].mxu0 %v2783_v6  ;;  %2078 = vmatprep.subr.bf16.mxu1 %v3294_v38  ;;  %v3338_v6 = vld [vmem:[#allocation26_spill] sm:$0xff] }
  0x88   : > { %2052 = vmatpush3.bf16.msra.mxu0 %v2889_v1  ;;  %887 = vmatprep.mubr.f32.mxu0 %v2800_v44  ;;  %v3336_v1 = vld [vmem:[#allocation22_spill] sm:$0xff]  ;;  %v3340_v44 = vld [vmem:[#allocation31_spill] sm:$0xff] }
  0x89   : > { %1053 = vmatmul.mubr.f32.gmra.mrb[26].mxu1 %v3332_v4  ;;  %2054 = vmatprep.subr.bf16.mxu0 %v2053_v52 }
  0x8a   : > { %2080 = vmatpush3.bf16.msra.mxu1 %v3295_v10  ;;  %1060 = vmatprep.mubr.f32.mxu1 %v3333_v49 }
  0x8b   : > { %890 = vmatmul.mubr.f32.gmra.mrb[30].mxu0 %v2807_v55  ;;  %2082 = vmatprep.subr.bf16.mxu1 %v3296_v34  ;;  %v2195_v55 = vmov 0.0  }
  0x8c   : > { %2056 = vmatpush3.bf16.msra.mxu0 %v2055_v26  ;;  %1241 = vmatprep.mubr.f32.mxu0 %v3334_v53  ;;  %1451 = vst.msk [vmem:[%s3019_s8] sm:$0xff] %vm1450_vm0, %v2195_v55  ;;  %1452 = vst.msk [vmem:[%s3019_s8 + $0x20] sm:$0xff] %vm1450_vm0, %v2195_v55 }
  0x8d   : > { %1064 = vmatmul.mubr.f32.gmra.mrb[28].mxu1 %v3335_v3  ;;  %1453 = vst.msk [vmem:[%s3019_s8 + $0x40] sm:$0xff] %vm1450_vm0, %v2195_v55  ;;  %1454 = vst.msk [vmem:[%s3019_s8 + $0x60] sm:$0xff] %vm1450_vm0, %v2195_v55 }
  0x8e   : > { %2084 = vmatpush3.bf16.msra.mxu1 %v3298_v28  ;;  %1071 = vmatprep.mubr.f32.mxu1 %v399_v42  ;;  %v3341_v42 = vld [vmem:[#allocation33_spill] sm:$0xff]  ;;  %1455 = vst.msk [vmem:[%s3019_s8 + $0x18] sm:$0xff] %vm1450_vm0, %v2195_v55  ;;  %1456 = vst.msk [vmem:[%s3019_s8 + $0x38] sm:$0xff] %vm1450_vm0, %v2195_v55 }
  0x8f   : > { %1243 = vmatmul.mubr.f32.vlgmr.msra.gmra.mrb[32].mxu0 %v3336_v1  ;;  %2086 = vmatprep.subr.bf16.mxu1 %v3300_v20  ;;  %1457 = vst.msk [vmem:[%s3019_s8 + $0x58] sm:$0xff] %vm1450_vm0, %v2195_v55  ;;  %1458 = vst.msk [vmem:[%s3019_s8 + $0x78] sm:$0xff] %vm1450_vm0, %v2195_v55 }
  0x90   : > { %1248 = vmatprep.mubr.f32.mxu0 %v3337_v25 }
  0x91   : > { %1075 = vmatmul.mubr.f32.gmra.mrb[30].mxu1 %v405_v15 }
  0x92   : > { %2088 = vmatpush3.bf16.msra.mxu1 %v3302_v50  ;;  %1394 = vmatprep.mubr.f32.mxu1 %v3334_v53 }
  0x93   : > { %1250 = vmatmul.mubr.f32.gmra.mrb[34].mxu0 %v3338_v6 }
  0x94   : > { %1255 = vmatprep.mubr.f32.mxu0 %v3339_v5 }
  0x95   : > { %1396 = vmatmul.mubr.f32.vlgmr.msra.gmra.mrb[32].mxu1 %v3336_v1 }
  0x96   : > { %1401 = vmatprep.mubr.f32.mxu1 %v3337_v25 }
  0x97   : > { %1257 = vmatmul.mubr.f32.gmra.mrb[36].mxu0 %v3340_v44 }
  0x98   : > { %1262 = vmatprep.mubr.f32.mxu0 %v3341_v42 }
  0x99   : > { %1403 = vmatmul.mubr.f32.gmra.mrb[34].mxu1 %v3338_v6 }
  0x9a   : > { %1408 = vmatprep.mubr.f32.mxu1 %v3339_v5 }
  0x9b   : > { %1264 = vmatmul.mubr.f32.gmra.mrb[38].mxu0 %v2689_v43 }
  0x9c   : > { %1269 = vmatprep.mubr.f32.mxu0 %v2695_v30 }
  0x9d   : > { %1410 = vmatmul.mubr.f32.gmra.mrb[36].mxu1 %v3340_v44 }
  0x9e   : > { %1415 = vmatprep.mubr.f32.mxu1 %v3341_v42 }
  0x9f   : > { %1271 = vmatmul.mubr.f32.gmra.mrb[40].mxu0 %v2706_v57 }
  0xa0   : > { %1276 = vmatprep.mubr.f32.mxu0 %v2723_v59 }
  0xa1   : > { %1417 = vmatmul.mubr.f32.gmra.mrb[38].mxu1 %v2689_v43 }
  0xa2   : > { %1422 = vmatprep.mubr.f32.mxu1 %v2695_v30 }
  0xa3   : > { %1278 = vmatmul.mubr.f32.gmra.mrb[42].mxu0 %v2730_v16 }
  0xa4   : > { %1283 = vmatprep.mubr.f32.mxu0 %v2753_v56 }
  0xa5   : > { %1424 = vmatmul.mubr.f32.gmra.mrb[40].mxu1 %v2706_v57 }
  0xa6   : > { %1429 = vmatprep.mubr.f32.mxu1 %v2723_v59 }
  0xa7   : > { %1285 = vmatmul.mubr.f32.gmra.mrb[44].mxu0 %v2766_v2 }
  0xa8   : > { %1290 = vmatprep.mubr.f32.mxu0 %v2785_v12 }
  0xa9   : > { %1431 = vmatmul.mubr.f32.gmra.mrb[42].mxu1 %v2730_v16 }
  0xaa   : > { %1436 = vmatprep.mubr.f32.mxu1 %v2753_v56 }
  0xab   : > { %1292 = vmatmul.mubr.f32.gmra.mrb[46].mxu0 %v2792_v31 }
  0xad   : > { %1438 = vmatmul.mubr.f32.gmra.mrb[44].mxu1 %v2766_v2 }
  0xae   : > { %1443 = vmatprep.mubr.f32.mxu1 %v2785_v12 }
  0xb1   : > { %1445 = vmatmul.mubr.f32.gmra.mrb[46].mxu1 %v2792_v31 }
 0x11c   : > { %v1593_v12 = vpop.f32.mrb[0].mxu0 }
 0x11d   : > { %v1594_v31 = vpop.f32.mrb[1].mxu0 }
 0x11e   : > { %v1595_v59 = vadd.f32 %v1594_v31, %v1593_v12 }
 0x122   : > { %v1596_v43 = vpop.f32.mrb[2].mxu0 }
 0x123   : > { %v1597_v30 = vpop.f32.mrb[3].mxu0 }
 0x124   : > { %v1598_v57 = vadd.f32 %v1597_v30, %v1596_v43 }
 0x126   : > { %v1649_v56 = vpop.f32.mrb[0].mxu1 }
 0x127   : > { %v1650_v16 = vpop.f32.mrb[1].mxu1 }
 0x128   : > { %v1651_v2 = vadd.f32 %v1650_v16, %v1649_v56  ;;  %v1599_v15 = vpop.f32.mrb[4].mxu0 }
 0x129   : > { %v1600_v9 = vpop.f32.mrb[5].mxu0 }
 0x12a   : > { %v642_v29 = vadd.f32 %v1651_v2, %v1595_v59  ;;  %v1652_v37 = vpop.f32.mrb[2].mxu1  ;;  %v1601_v38 = vadd.f32 %v1600_v9, %v1599_v15 }
 0x12b   : > { %v1653_v10 = vpop.f32.mrb[3].mxu1 }
 0x12c   : > { %v1654_v34 = vadd.f32 %v1653_v10, %v1652_v37  ;;  %v1602_v60 = vpop.f32.mrb[6].mxu0 }
 0x12d   : > { %v1603_v28 = vpop.f32.mrb[7].mxu0 }
 0x12e   : > { %v649_v13 = vadd.f32 %v1654_v34, %v1598_v57  ;;  %v1655_v20 = vpop.f32.mrb[4].mxu1  ;;  %v1604_v35 = vadd.f32 %v1603_v28, %v1602_v60 }
 0x12f   : > { %v1656_v50 = vpop.f32.mrb[5].mxu1 }
 0x130   : > { %v1657_v8 = vadd.f32 %v1656_v50, %v1655_v20  ;;  %v1605_v47 = vpop.f32.mrb[8].mxu0 }
 0x131   : > { %v1606_v41 = vpop.f32.mrb[9].mxu0 }
 0x132   : > { %v656_v61 = vadd.f32 %v1657_v8, %v1601_v38  ;;  %v1658_v0 = vpop.f32.mrb[6].mxu1  ;;  %v1607_v36 = vadd.f32 %v1606_v41, %v1605_v47 }
 0x133   : > { %v1659_v33 = vpop.f32.mrb[7].mxu1 }
 0x134   : > { %v1660_v17 = vadd.f32 %v1659_v33, %v1658_v0  ;;  %v1608_v18 = vpop.f32.mrb[10].mxu0 }
 0x135   : > { %v1609_v14 = vpop.f32.mrb[11].mxu0 }
 0x136   : > { %v663_v24 = vadd.f32 %v1660_v17, %v1604_v35  ;;  %v1661_v11 = vpop.f32.mrb[8].mxu1  ;;  %v1610_v54 = vadd.f32 %v1609_v14, %v1608_v18 }
 0x137   : > { %v1662_v22 = vpop.f32.mrb[9].mxu1 }
 0x138   : > { %v1663_v48 = vadd.f32 %v1662_v22, %v1661_v11 }
 0x13a   : > { %v1611_v27 = vpop.f32.mrb[12].mxu0  ;;  %v670_v39 = vadd.f32 %v1663_v48, %v1607_v36  ;;  %v1664_v45 = vpop.f32.mrb[10].mxu1 }
 0x13b   : > { %v1612_v40 = vpop.f32.mrb[13].mxu0  ;;  %v1665_v63 = vpop.f32.mrb[11].mxu1 }
 0x13c   : > { %v1613_v46 = vadd.f32 %v1612_v40, %v1611_v27  ;;  %v1666_v21 = vadd.f32 %v1665_v63, %v1664_v45 }
 0x13e   : > { %v1614_v19 = vpop.f32.mrb[14].mxu0  ;;  %v677_v51 = vadd.f32 %v1666_v21, %v1610_v54 }
 0x13f   : > { %v1615_v58 = vpop.f32.mrb[15].mxu0  ;;  %v1667_v52 = vpop.f32.mrb[12].mxu1 }
 0x140   : > { %v1616_v32 = vadd.f32 %v1615_v58, %v1614_v19  ;;  %v1668_v62 = vpop.f32.mrb[13].mxu1 }
 0x141   : > { %v1669_v7 = vadd.f32 %v1668_v62, %v1667_v52 }
 0x142   : > { %v1705_v23 = vpop.f32.mrb[16].mxu0 }
 0x143   : > { %v1706_v26 = vpop.f32.mrb[17].mxu0  ;;  %v684_v4 = vadd.f32 %v1669_v7, %v1613_v46 }
 0x144   : > { %v1707_v49 = vadd.f32 %v1706_v26, %v1705_v23  ;;  %v1670_v53 = vpop.f32.mrb[14].mxu1 }
 0x145   : > { %v1671_v3 = vpop.f32.mrb[15].mxu1 }
 0x146   : > { %v829_v1 = vadd.f32 %v1707_v49, %v642_v29  ;;  %v1708_v25 = vpop.f32.mrb[18].mxu0  ;;  %v1672_v6 = vadd.f32 %v1671_v3, %v1670_v53 }
 0x147   : > { %v1709_v5 = vpop.f32.mrb[19].mxu0 }
 0x148   : > { %v691_v44 = vadd.f32 %v1672_v6, %v1616_v32  ;;  %v1710_v42 = vadd.f32 %v1709_v5, %v1708_v25  ;;  %v1761_v55 = vpop.f32.mrb[16].mxu1 }
 0x149   : > { %v1762_v12 = vpop.f32.mrb[17].mxu1 }
 0x14a   : > { %v838_v31 = vadd.f32 %v1710_v42, %v649_v13  ;;  %v1711_v59 = vpop.f32.mrb[20].mxu0  ;;  %v1763_v43 = vadd.f32 %v1762_v12, %v1761_v55 }
 0x14b   : > { %v1712_v30 = vpop.f32.mrb[21].mxu0 }
 0x14c   : > { %v1713_v57 = vadd.f32 %v1712_v30, %v1711_v59  ;;  %v1000_v56 = vadd.f32 %v1763_v43, %v829_v1  ;;  %v1764_v16 = vpop.f32.mrb[18].mxu1 }
 0x14d   : > { %v1765_v2 = vpop.f32.mrb[19].mxu1 }
 0x14e   : > { %v847_v15 = vadd.f32 %v1713_v57, %v656_v61  ;;  %v1714_v9 = vpop.f32.mrb[22].mxu0  ;;  %v1766_v37 = vadd.f32 %v1765_v2, %v1764_v16 }
 0x14f   : > { %v1715_v38 = vpop.f32.mrb[23].mxu0 }
 0x150   : > { %v1716_v29 = vadd.f32 %v1715_v38, %v1714_v9  ;;  %v1011_v10 = vadd.f32 %v1766_v37, %v838_v31  ;;  %v1767_v34 = vpop.f32.mrb[20].mxu1 }
 0x151   : > { %v1768_v60 = vpop.f32.mrb[21].mxu1 }
 0x152   : > { %v856_v28 = vadd.f32 %v1716_v29, %v663_v24  ;;  %v1717_v20 = vpop.f32.mrb[24].mxu0  ;;  %v1769_v35 = vadd.f32 %v1768_v60, %v1767_v34 }
 0x153   : > { %v1718_v50 = vpop.f32.mrb[25].mxu0 }
 0x154   : > { %v1719_v13 = vadd.f32 %v1718_v50, %v1717_v20  ;;  %v1022_v8 = vadd.f32 %v1769_v35, %v847_v15  ;;  %v1770_v47 = vpop.f32.mrb[22].mxu1 }
 0x155   : > { %v1771_v41 = vpop.f32.mrb[23].mxu1 }
 0x156   : > { %v865_v0 = vadd.f32 %v1719_v13, %v670_v39  ;;  %v1720_v36 = vpop.f32.mrb[26].mxu0  ;;  %v1772_v33 = vadd.f32 %v1771_v41, %v1770_v47 }
 0x157   : > { %v1721_v17 = vpop.f32.mrb[27].mxu0 }
 0x158   : > { %v1722_v61 = vadd.f32 %v1721_v17, %v1720_v36  ;;  %v1033_v18 = vadd.f32 %v1772_v33, %v856_v28  ;;  %v1773_v14 = vpop.f32.mrb[24].mxu1 }
 0x159   : > { %v1774_v11 = vpop.f32.mrb[25].mxu1 }
 0x15a   : > { %v874_v54 = vadd.f32 %v1722_v61, %v677_v51  ;;  %v1723_v22 = vpop.f32.mrb[28].mxu0  ;;  %v1775_v48 = vadd.f32 %v1774_v11, %v1773_v14 }
 0x15b   : > { %v1724_v27 = vpop.f32.mrb[29].mxu0 }
 0x15c   : > { %v1725_v24 = vadd.f32 %v1724_v27, %v1723_v22  ;;  %v1044_v40 = vadd.f32 %v1775_v48, %v865_v0  ;;  %v1776_v45 = vpop.f32.mrb[26].mxu1 }
 0x15d   : > { %v1777_v46 = vpop.f32.mrb[27].mxu1 }
 0x15e   : > { %v883_v63 = vadd.f32 %v1725_v24, %v684_v4  ;;  %v1726_v21 = vpop.f32.mrb[30].mxu0  ;;  %v1778_v19 = vadd.f32 %v1777_v46, %v1776_v45 }
 0x15f   : > { %v1727_v58 = vpop.f32.mrb[31].mxu0 }
 0x160   : > { %v1728_v39 = vadd.f32 %v1727_v58, %v1726_v21  ;;  %v1055_v32 = vadd.f32 %v1778_v19, %v874_v54  ;;  %v1779_v52 = vpop.f32.mrb[28].mxu1 }
 0x161   : > { %v1780_v62 = vpop.f32.mrb[29].mxu1 }
 0x162   : > { %v892_v23 = vadd.f32 %v1728_v39, %v691_v44  ;;  %v1817_v7 = vpop.f32.mrb[32].mxu0  ;;  %v1781_v26 = vadd.f32 %v1780_v62, %v1779_v52 }
 0x163   : > { %v1818_v49 = vpop.f32.mrb[33].mxu0 }
 0x164   : > { %v1066_v51 = vadd.f32 %v1781_v26, %v883_v63  ;;  %v1819_v53 = vadd.f32 %v1818_v49, %v1817_v7  ;;  %v1782_v3 = vpop.f32.mrb[30].mxu1 }
 0x165   : > { %v1783_v1 = vpop.f32.mrb[31].mxu1 }
 0x166   : > { %v1245_v25 = vadd.f32 %v1819_v53, %v1000_v56  ;;  %v1820_v6 = vpop.f32.mrb[34].mxu0  ;;  %v1784_v5 = vadd.f32 %v1783_v1, %v1782_v3 }
 0x167   : > { %v1821_v4 = vpop.f32.mrb[35].mxu0 }
 0x168   : > { %v1077_v42 = vadd.f32 %v1784_v5, %v892_v23  ;;  %v1822_v55 = vadd.f32 %v1821_v4, %v1820_v6  ;;  %v1873_v12 = vpop.f32.mrb[32].mxu1 }
 0x169   : > { %v1874_v31 = vpop.f32.mrb[33].mxu1 }
 0x16a   : > { %v1252_v59 = vadd.f32 %v1822_v55, %v1011_v10  ;;  %v1823_v43 = vpop.f32.mrb[36].mxu0  ;;  %v1875_v30 = vadd.f32 %v1874_v31, %v1873_v12 }
 0x16b   : > { %v1824_v44 = vpop.f32.mrb[37].mxu0 }
 0x16c   : > { %v1825_v57 = vadd.f32 %v1824_v44, %v1823_v43  ;;  %v1398_v16 = vadd.f32 %v1875_v30, %v1245_v25  ;;  %v1876_v2 = vpop.f32.mrb[34].mxu1 }
 0x16d   : > { %v1877_v15 = vpop.f32.mrb[35].mxu1 }
 0x16e   : > { %v1259_v9 = vadd.f32 %v1825_v57, %v1022_v8  ;;  %1459 = vst.msk [vmem:[%s3019_s8 + $0x8] sm:$0xff] %vm1450_vm0, %v1398_v16  ;;  %v1826_v56 = vpop.f32.mrb[38].mxu0  ;;  %v1878_v37 = vadd.f32 %v1877_v15, %v1876_v2 }
 0x16f   : > { %v1827_v38 = vpop.f32.mrb[39].mxu0 }
 0x170   : > { %v1828_v29 = vadd.f32 %v1827_v38, %v1826_v56  ;;  %v1405_v34 = vadd.f32 %v1878_v37, %v1252_v59  ;;  %v1879_v60 = vpop.f32.mrb[36].mxu1 }
 0x171   : > { %v1880_v28 = vpop.f32.mrb[37].mxu1 }
 0x172   : > { %v1266_v10 = vadd.f32 %v1828_v29, %v1033_v18  ;;  %1460 = vst.msk [vmem:[%s3019_s8 + $0x10] sm:$0xff] %vm1450_vm0, %v1405_v34  ;;  %v1829_v20 = vpop.f32.mrb[40].mxu0  ;;  %v1881_v35 = vadd.f32 %v1880_v28, %v1879_v60 }
 0x173   : > { %v1830_v50 = vpop.f32.mrb[41].mxu0 }
 0x174   : > { %v1831_v13 = vadd.f32 %v1830_v50, %v1829_v20  ;;  %v1412_v47 = vadd.f32 %v1881_v35, %v1259_v9  ;;  %v1882_v8 = vpop.f32.mrb[38].mxu1 }
 0x175   : > { %v1883_v41 = vpop.f32.mrb[39].mxu1 }
 0x176   : > { %v1273_v0 = vadd.f32 %v1831_v13, %v1044_v40  ;;  %1461 = vst.msk [vmem:[%s3019_s8 + $0x28] sm:$0xff] %vm1450_vm0, %v1412_v47  ;;  %v1832_v36 = vpop.f32.mrb[42].mxu0  ;;  %v1884_v33 = vadd.f32 %v1883_v41, %v1882_v8 }
 0x177   : > { %v1833_v17 = vpop.f32.mrb[43].mxu0 }
 0x178   : > { %v1834_v61 = vadd.f32 %v1833_v17, %v1832_v36  ;;  %v1419_v14 = vadd.f32 %v1884_v33, %v1266_v10  ;;  %v1885_v18 = vpop.f32.mrb[40].mxu1 }
 0x179   : > { %v1886_v11 = vpop.f32.mrb[41].mxu1 }
 0x17a   : > { %v1280_v54 = vadd.f32 %v1834_v61, %v1055_v32  ;;  %1462 = vst.msk [vmem:[%s3019_s8 + $0x30] sm:$0xff] %vm1450_vm0, %v1419_v14  ;;  %v1835_v22 = vpop.f32.mrb[44].mxu0  ;;  %v1887_v48 = vadd.f32 %v1886_v11, %v1885_v18 }
 0x17b   : > { %v1836_v27 = vpop.f32.mrb[45].mxu0 }
 0x17c   : > { %v1837_v24 = vadd.f32 %v1836_v27, %v1835_v22  ;;  %v1426_v45 = vadd.f32 %v1887_v48, %v1273_v0  ;;  %v1888_v40 = vpop.f32.mrb[42].mxu1 }
 0x17d   : > { %v1889_v46 = vpop.f32.mrb[43].mxu1 }
 0x17e   : > { %v1287_v63 = vadd.f32 %v1837_v24, %v1066_v51  ;;  %1463 = vst.msk [vmem:[%s3019_s8 + $0x48] sm:$0xff] %vm1450_vm0, %v1426_v45  ;;  %v1838_v21 = vpop.f32.mrb[46].mxu0  ;;  %v1890_v19 = vadd.f32 %v1889_v46, %v1888_v40 }
 0x17f   : > { %v1839_v58 = vpop.f32.mrb[47].mxu0 }
 0x180   : > { %v1840_v39 = vadd.f32 %v1839_v58, %v1838_v21  ;;  %v1433_v32 = vadd.f32 %v1890_v19, %v1280_v54  ;;  %v1891_v52 = vpop.f32.mrb[44].mxu1 }
 0x181   : > { %v1892_v62 = vpop.f32.mrb[45].mxu1 }
 0x182   : > { %v1294_v23 = vadd.f32 %v1840_v39, %v1077_v42  ;;  %1464 = vst.msk [vmem:[%s3019_s8 + $0x50] sm:$0xff] %vm1450_vm0, %v1433_v32  ;;  %v1893_v7 = vadd.f32 %v1892_v62, %v1891_v52 }
 0x184   : > { %v1440_v26 = vadd.f32 %v1893_v7, %v1287_v63  ;;  %v1894_v49 = vpop.f32.mrb[46].mxu1 }
 0x185   : > { %v1895_v51 = vpop.f32.mrb[47].mxu1 }
 0x186   : > { %1465 = vst.msk [vmem:[%s3019_s8 + $0x68] sm:$0xff] %vm1450_vm0, %v1440_v26  ;;  %v1896_v53 = vadd.f32 %v1895_v51, %v1894_v49 }
 0x188   : > { %v1447_v3 = vadd.f32 %v1896_v53, %v1294_v23 }
 0x18a   : > { %1466 = vst.msk [vmem:[%s3019_s8 + $0x70] sm:$0xff] %vm1450_vm0, %v1447_v3 }
 0x18b   : > { %2144 = shalt.err (!%p2141_p3)
}
 0x18c   : > { %s2145_s27 = scalar_lea.hbm %s3056_s22, 2048  ;;  %s2149_s30 = scalar_lea.hbm %s3107_s2, 4096 }
 0x18d   : > { %p2146_p4 = scmp.ne.s32.totalorder %s3056_s22, %s2145_s27  ;;  %p2150_p9 = scmp.lt.u32.totalorder %s3056_s22, %s3107_s2 }
 0x18e   : > { %p2151_p10 = scmp.lt.u32.totalorder %s2149_s30, %s2145_s27  ;;  %p2153_p12 = scmp.lt.u32.totalorder %s2145_s27, %s3056_s22 }
 0x18f   : > { %p2147_p7 = pnand %p2146_p4, %p2252_p5 }
 0x190   : > { %p2152_p11 = por %p2151_p10, %p2150_p9 }
 0x191   : > { %p2148_p8 = pneg %p2147_p7 }
 0x192   : > { %p2154_p13 = por %p2153_p12, %p2152_p11 }
 0x194   : > { %p2155_p0 = pnand %p2154_p13, %p2148_p8 }
 0x196   : > { %2158 = shalt.err (!%p2155_p0)
}
 0x197   : > { %s2197_s5 = smov 128   ;;  %s2198_s6 = smov 8  }
 0x198   : > { %2089 = dma.vmem_to_hbm [thread:$0]  (%p2252_p5), %s3058_s16, 2048, %s3056_s22, %s3064_s13, %s2197_s5, %s2197_s5, %s2198_s6  }
 0x199 PF: > { %p2095_p1 = scmp.ge.s32.totalorder %s2193_s12, 2  ;;  %s1497_s7 = sand.u32 1, %s2181_s9  }
 0x19a   : > { %s1498_s8 = scalar_lea.sflag [#allocation3], %s1497_s7 }
 0x19b   : > { %p2092_p2 = pnand %p2095_p1, %p2256_p6 }
 0x19d   : > { %2176 = dma.done.wait (!%p2092_p2), %s1498_s8, 2048  }
 0x19e   : > { %2178 = vsyncadd (!%p2092_p2), %s1498_s8, 4294965248  ;;  %p12_p3 = scmp.ge.s32.totalorder %s2239_s15, 4   ;;  %s3342_s9 = smov %s2185_s10 }
 0x19f   : > { %s3343_s10 = smov %s2189_s11  ;;  %s3344_s11 = smov %s2250_s18 }
 0x1a0   : > { %s3345_s12 = smov %s2239_s15  ;;  %14 = sbr.rel (!%p12_p3) target bundleno = 3 (0x3), region = 63 }
 0x1a7   :  { %1503 = vsyncpa [#allocation3], 1 }
 0x1a8   :  { %1505 = vsyncpa [#allocation3 + $0x1], 1 }

</bundles_post_ra>
